<compile_context>
chip_gen: v7x
topology: tpu7x:2x2x1
jax: 0.10.0
libtpu: 0.0.40
codegen_flags: <defaults>
</compile_context>

<pallas_src>
import jax
import jax.numpy as jnp
from jax import lax
from jax.experimental import pallas as pl
from jax.experimental.pallas import tpu as pltpu


def lstm_kernel(xg_ref, whh_ref, wout_ref, bout_ref, out_ref):
    """Single-invocation LSTM recurrence over a VMEM-resident gate slab.

    xg_ref:   (T, B, 4H)  precomputed x_t @ W_ih^T + (b_ih + b_hh), gate order i,f,g,o
    whh_ref:  (H, 4H)     recurrent weights, W_hh^T (gate order i,f,g,o along 4H)
    wout_ref: (H, 1)      output head weight
    bout_ref: (1, 1)      output head bias
    out_ref:  (B, 1)      sigmoid(linear(h_T))
    """
    T = xg_ref.shape[0]
    B = out_ref.shape[0]
    H = whh_ref.shape[0]

    # Hoist weight loads out of the unrolled time loop.
    w_hh = whh_ref[...]          # (H, 4H)
    w_out = wout_ref[...]        # (H, 1)
    b_out = bout_ref[...]        # (1, 1)

    def step(t, carry):
        h, c = carry
        # One wide MXU matmul per step; x-projection already folded into xg.
        pre = xg_ref[t] + jnp.dot(h, w_hh, preferred_element_type=jnp.float32)
        i_g = jax.nn.sigmoid(pre[:, 0 * H:1 * H])
        f_g = jax.nn.sigmoid(pre[:, 1 * H:2 * H])
        g_g = jnp.tanh(pre[:, 2 * H:3 * H])
        o_g = jax.nn.sigmoid(pre[:, 3 * H:4 * H])
        c_new = f_g * c + i_g * g_g
        h_new = o_g * jnp.tanh(c_new)
        return (h_new, c_new)

    h0 = jnp.zeros((B, H), jnp.float32)
    c0 = jnp.zeros((B, H), jnp.float32)
    h, _ = lax.fori_loop(0, T, step, (h0, c0), unroll=True)

    # TODO(synk): dropout_layer is identity in eval mode; training-mode dropout not implemented.
    logits = jnp.dot(h, w_out, preferred_element_type=jnp.float32) + b_out
    out_ref[...] = jax.nn.sigmoid(logits)


def lstm_model_forward(X, params):
    """X: int32 [B, T] token ids. Returns float32 [B] probabilities."""
    emb = params["embedding"]                    # (V, E)
    w_ih_T = params["w_ih_T"]                    # (E, 4H)
    w_hh_T = params["w_hh_T"]                    # (H, 4H)
    H = w_hh_T.shape[0]
    b = (params["b_ih"] + params["b_hh"]).reshape(1, 4 * H)

    B, T = X.shape
    E = emb.shape[1]

    # Hoisted input projection: gather embeddings, project all tokens at once
    # (one (B*T, E) @ (E, 4H) matmul + fused bias), done outside the recurrence.
    emb_x = jnp.take(emb, X, axis=0)                         # (B, T, E)
    x_gates = jnp.dot(emb_x.reshape(B * T, E), w_ih_T) + b   # (B*T, 4H)
    x_gates = x_gates.reshape(B, T, 4 * H)

    B_pad = max(8, ((B + 7) // 8) * 8)           # sublane-align the batch dim
    if B_pad != B:
        x_gates = jnp.pad(x_gates, ((0, B_pad - B), (0, 0), (0, 0)))

    # Time-major slab: (T, B_pad, 4H)
    xg = jnp.transpose(x_gates, (1, 0, 2))

    wout = params["w_out"].reshape(H, 1)         # (H, 1)
    bout = params["b_out"].reshape(1, 1)         # (1, 1)

    out = pl.pallas_call(
        lstm_kernel,
        out_shape=jax.ShapeDtypeStruct((B_pad, 1), jnp.float32),
        in_specs=[
            pl.BlockSpec(memory_space=pltpu.MemorySpace.VMEM),  # gate slab
            pl.BlockSpec(memory_space=pltpu.MemorySpace.VMEM),  # W_hh^T
            pl.BlockSpec(memory_space=pltpu.MemorySpace.VMEM),  # W_out
            pl.BlockSpec(memory_space=pltpu.MemorySpace.VMEM),  # b_out
        ],
        out_specs=pl.BlockSpec(memory_space=pltpu.MemorySpace.VMEM),
    )(xg, w_hh_T, wout, bout)

    return out[:B, 0]   # (B,)  == .squeeze() in the PyTorch module


def init_params(key, max_features, embedding_dim, hidden_dim):
    ks = jax.random.split(key, 7)
    V, E, H = max_features, embedding_dim, hidden_dim
    bound = 1.0 / jnp.sqrt(jnp.float32(H))
    u = lambda k, shape: jax.random.uniform(k, shape, jnp.float32, -bound, bound)
    return {
        "embedding": jax.random.normal(ks[0], (V, E), jnp.float32),
        # stored pre-transposed relative to PyTorch (4H,E)/(4H,H)
        "w_ih_T": u(ks[1], (E, 4 * H)),
        "w_hh_T": u(ks[2], (H, 4 * H)),
        "b_ih": u(ks[3], (4 * H,)),
        "b_hh": u(ks[4], (4 * H,)),
        "w_out": u(ks[5], (H,)),       # Linear(H, 1) weight
        "b_out": u(ks[6], (1,)),
    }


def reference_forward(X, params):
    """Pure-JAX reference (lax.scan LSTM) for validation."""
    emb = jnp.take(params["embedding"], X, axis=0)      # (B, T, E)
    B, T, E = emb.shape
    H = params["w_hh_T"].shape[0]
    b = params["b_ih"] + params["b_hh"]

    def step(carry, x_t):
        h, c = carry
        gates = x_t @ params["w_ih_T"] + h @ params["w_hh_T"] + b
        i = jax.nn.sigmoid(gates[:, 0 * H:1 * H])
        f = jax.nn.sigmoid(gates[:, 1 * H:2 * H])
        g = jnp.tanh(gates[:, 2 * H:3 * H])
        o = jax.nn.sigmoid(gates[:, 3 * H:4 * H])
        c = f * c + i * g
        h = o * jnp.tanh(c)
        return (h, c), None

    h0 = jnp.zeros((B, H), jnp.float32)
    (h, _), _ = jax.lax.scan(step, (h0, h0), jnp.transpose(emb, (1, 0, 2)))
    logits = h @ params["w_out"].reshape(H, 1) + params["b_out"].reshape(1, 1)
    return jax.nn.sigmoid(logits)[:, 0]


if __name__ == "__main__":
    max_features = 100
    embedding_dim = 32
    hidden_dim = 32
    batch = 2
    seq = 8

    key = jax.random.PRNGKey(0)
    k_param, k_x = jax.random.split(key)
    params = init_params(k_param, max_features, embedding_dim, hidden_dim)
    X = jax.random.randint(k_x, (batch, seq), 0, max_features, dtype=jnp.int32)

    fwd = jax.jit(lstm_model_forward)
    out = jax.block_until_ready(fwd(X, params))
    ref = jax.block_until_ready(reference_forward(X, params))

    assert out.shape == (batch,)
    assert jnp.allclose(out, ref, atol=1e-5, rtol=1e-5), (out, ref)
    print("KERNEL_OK")
</pallas_src>

<mosaic_0001>
module attributes {stable_mosaic.version = 11 : i64} {
  func.func @lstm_kernel(%arg0: memref<8x8x128xf32, #tpu.memory_space<vmem>>, %arg1: memref<32x128xf32, #tpu.memory_space<vmem>>, %arg2: memref<32x1xf32, #tpu.memory_space<vmem>>, %arg3: memref<1x1xf32, #tpu.memory_space<vmem>>, %arg4: memref<8x1xf32, #tpu.memory_space<vmem>>) attributes {dimension_semantics = [], scalar_prefetch = 0 : i64, scratch_operands = 0 : i64, tpu.core_type = #tpu.core_type<tc>} {
    %c0 = arith.constant 0 : index
    %c0_0 = arith.constant 0 : index
    %0 = vector.load %arg1[%c0, %c0_0] : memref<32x128xf32, #tpu.memory_space<vmem>>, vector<32x128xf32>
    %c0_1 = arith.constant 0 : index
    %c0_2 = arith.constant 0 : index
    %1 = vector.load %arg2[%c0_1, %c0_2] : memref<32x1xf32, #tpu.memory_space<vmem>>, vector<32x1xf32>
    %c0_3 = arith.constant 0 : index
    %c0_4 = arith.constant 0 : index
    %2 = vector.load %arg3[%c0_3, %c0_4] : memref<1x1xf32, #tpu.memory_space<vmem>>, vector<1x1xf32>
    %cst = arith.constant 0.000000e+00 : f32
    %3 = vector.broadcast %cst : f32 to vector<8x32xf32>
    %cst_5 = arith.constant 0.000000e+00 : f32
    %4 = vector.broadcast %cst_5 : f32 to vector<8x32xf32>
    %c0_i32 = arith.constant 0 : i32
    %5 = arith.index_cast %c0_i32 : i32 to index
    %c0_6 = arith.constant 0 : index
    %c0_7 = arith.constant 0 : index
    %6 = vector.load %arg0[%5, %c0_6, %c0_7] : memref<8x8x128xf32, #tpu.memory_space<vmem>>, vector<1x8x128xf32>
    %7 = vector.shape_cast %6 : vector<1x8x128xf32> to vector<8x128xf32>
    %cst_8 = arith.constant dense<0.000000e+00> : vector<8x128xf32>
    %8 = tpu.matmul %3, %0, %cst_8 {dimension_numbers = #tpu.dot_dimension_numbers<[1], [0], [0], [1], [0, 0, 1, 1], [], []>} : vector<8x32xf32>, vector<32x128xf32>, vector<8x128xf32> -> vector<8x128xf32>
    %9 = arith.addf %7, %8 : vector<8x128xf32>
    %10 = vector.extract_strided_slice %9 {offsets = [0, 0], sizes = [8, 32], strides = [1, 1]} : vector<8x128xf32> to vector<8x32xf32>
    %11 = arith.negf %10 : vector<8x32xf32>
    %12 = math.exp %11 : vector<8x32xf32>
    %cst_9 = arith.constant 1.000000e+00 : f32
    %13 = vector.broadcast %cst_9 : f32 to vector<8x32xf32>
    %14 = arith.addf %13, %12 : vector<8x32xf32>
    %15 = arith.divf %13, %14 : vector<8x32xf32>
    %16 = vector.extract_strided_slice %9 {offsets = [0, 32], sizes = [8, 32], strides = [1, 1]} : vector<8x128xf32> to vector<8x32xf32>
    %17 = arith.negf %16 : vector<8x32xf32>
    %18 = math.exp %17 : vector<8x32xf32>
    %cst_10 = arith.constant 1.000000e+00 : f32
    %19 = vector.broadcast %cst_10 : f32 to vector<8x32xf32>
    %20 = arith.addf %19, %18 : vector<8x32xf32>
    %21 = arith.divf %19, %20 : vector<8x32xf32>
    %22 = vector.extract_strided_slice %9 {offsets = [0, 64], sizes = [8, 32], strides = [1, 1]} : vector<8x128xf32> to vector<8x32xf32>
    %23 = math.tanh %22 : vector<8x32xf32>
    %24 = vector.extract_strided_slice %9 {offsets = [0, 96], sizes = [8, 32], strides = [1, 1]} : vector<8x128xf32> to vector<8x32xf32>
    %25 = arith.negf %24 : vector<8x32xf32>
    %26 = math.exp %25 : vector<8x32xf32>
    %cst_11 = arith.constant 1.000000e+00 : f32
    %27 = vector.broadcast %cst_11 : f32 to vector<8x32xf32>
    %28 = arith.addf %27, %26 : vector<8x32xf32>
    %29 = arith.divf %27, %28 : vector<8x32xf32>
    %30 = arith.mulf %21, %4 : vector<8x32xf32>
    %31 = arith.mulf %15, %23 : vector<8x32xf32>
    %32 = arith.addf %30, %31 : vector<8x32xf32>
    %33 = math.tanh %32 : vector<8x32xf32>
    %34 = arith.mulf %29, %33 : vector<8x32xf32>
    %c1_i32 = arith.constant 1 : i32
    %35 = arith.index_cast %c1_i32 : i32 to index
    %c0_12 = arith.constant 0 : index
    %c0_13 = arith.constant 0 : index
    %36 = vector.load %arg0[%35, %c0_12, %c0_13] : memref<8x8x128xf32, #tpu.memory_space<vmem>>, vector<1x8x128xf32>
    %37 = vector.shape_cast %36 : vector<1x8x128xf32> to vector<8x128xf32>
    %cst_14 = arith.constant dense<0.000000e+00> : vector<8x128xf32>
    %38 = tpu.matmul %34, %0, %cst_14 {dimension_numbers = #tpu.dot_dimension_numbers<[1], [0], [0], [1], [0, 0, 1, 1], [], []>} : vector<8x32xf32>, vector<32x128xf32>, vector<8x128xf32> -> vector<8x128xf32>
    %39 = arith.addf %37, %38 : vector<8x128xf32>
    %40 = vector.extract_strided_slice %39 {offsets = [0, 0], sizes = [8, 32], strides = [1, 1]} : vector<8x128xf32> to vector<8x32xf32>
    %41 = arith.negf %40 : vector<8x32xf32>
    %42 = math.exp %41 : vector<8x32xf32>
    %cst_15 = arith.constant 1.000000e+00 : f32
    %43 = vector.broadcast %cst_15 : f32 to vector<8x32xf32>
    %44 = arith.addf %43, %42 : vector<8x32xf32>
    %45 = arith.divf %43, %44 : vector<8x32xf32>
    %46 = vector.extract_strided_slice %39 {offsets = [0, 32], sizes = [8, 32], strides = [1, 1]} : vector<8x128xf32> to vector<8x32xf32>
    %47 = arith.negf %46 : vector<8x32xf32>
    %48 = math.exp %47 : vector<8x32xf32>
    %cst_16 = arith.constant 1.000000e+00 : f32
    %49 = vector.broadcast %cst_16 : f32 to vector<8x32xf32>
    %50 = arith.addf %49, %48 : vector<8x32xf32>
    %51 = arith.divf %49, %50 : vector<8x32xf32>
    %52 = vector.extract_strided_slice %39 {offsets = [0, 64], sizes = [8, 32], strides = [1, 1]} : vector<8x128xf32> to vector<8x32xf32>
    %53 = math.tanh %52 : vector<8x32xf32>
    %54 = vector.extract_strided_slice %39 {offsets = [0, 96], sizes = [8, 32], strides = [1, 1]} : vector<8x128xf32> to vector<8x32xf32>
    %55 = arith.negf %54 : vector<8x32xf32>
    %56 = math.exp %55 : vector<8x32xf32>
    %cst_17 = arith.constant 1.000000e+00 : f32
    %57 = vector.broadcast %cst_17 : f32 to vector<8x32xf32>
    %58 = arith.addf %57, %56 : vector<8x32xf32>
    %59 = arith.divf %57, %58 : vector<8x32xf32>
    %60 = arith.mulf %51, %32 : vector<8x32xf32>
    %61 = arith.mulf %45, %53 : vector<8x32xf32>
    %62 = arith.addf %60, %61 : vector<8x32xf32>
    %63 = math.tanh %62 : vector<8x32xf32>
    %64 = arith.mulf %59, %63 : vector<8x32xf32>
    %c2_i32 = arith.constant 2 : i32
    %65 = arith.index_cast %c2_i32 : i32 to index
    %c0_18 = arith.constant 0 : index
    %c0_19 = arith.constant 0 : index
    %66 = vector.load %arg0[%65, %c0_18, %c0_19] : memref<8x8x128xf32, #tpu.memory_space<vmem>>, vector<1x8x128xf32>
    %67 = vector.shape_cast %66 : vector<1x8x128xf32> to vector<8x128xf32>
    %cst_20 = arith.constant dense<0.000000e+00> : vector<8x128xf32>
    %68 = tpu.matmul %64, %0, %cst_20 {dimension_numbers = #tpu.dot_dimension_numbers<[1], [0], [0], [1], [0, 0, 1, 1], [], []>} : vector<8x32xf32>, vector<32x128xf32>, vector<8x128xf32> -> vector<8x128xf32>
    %69 = arith.addf %67, %68 : vector<8x128xf32>
    %70 = vector.extract_strided_slice %69 {offsets = [0, 0], sizes = [8, 32], strides = [1, 1]} : vector<8x128xf32> to vector<8x32xf32>
    %71 = arith.negf %70 : vector<8x32xf32>
    %72 = math.exp %71 : vector<8x32xf32>
    %cst_21 = arith.constant 1.000000e+00 : f32
    %73 = vector.broadcast %cst_21 : f32 to vector<8x32xf32>
    %74 = arith.addf %73, %72 : vector<8x32xf32>
    %75 = arith.divf %73, %74 : vector<8x32xf32>
    %76 = vector.extract_strided_slice %69 {offsets = [0, 32], sizes = [8, 32], strides = [1, 1]} : vector<8x128xf32> to vector<8x32xf32>
    %77 = arith.negf %76 : vector<8x32xf32>
    %78 = math.exp %77 : vector<8x32xf32>
    %cst_22 = arith.constant 1.000000e+00 : f32
    %79 = vector.broadcast %cst_22 : f32 to vector<8x32xf32>
    %80 = arith.addf %79, %78 : vector<8x32xf32>
    %81 = arith.divf %79, %80 : vector<8x32xf32>
    %82 = vector.extract_strided_slice %69 {offsets = [0, 64], sizes = [8, 32], strides = [1, 1]} : vector<8x128xf32> to vector<8x32xf32>
    %83 = math.tanh %82 : vector<8x32xf32>
    %84 = vector.extract_strided_slice %69 {offsets = [0, 96], sizes = [8, 32], strides = [1, 1]} : vector<8x128xf32> to vector<8x32xf32>
    %85 = arith.negf %84 : vector<8x32xf32>
    %86 = math.exp %85 : vector<8x32xf32>
    %cst_23 = arith.constant 1.000000e+00 : f32
    %87 = vector.broadcast %cst_23 : f32 to vector<8x32xf32>
    %88 = arith.addf %87, %86 : vector<8x32xf32>
    %89 = arith.divf %87, %88 : vector<8x32xf32>
    %90 = arith.mulf %81, %62 : vector<8x32xf32>
    %91 = arith.mulf %75, %83 : vector<8x32xf32>
    %92 = arith.addf %90, %91 : vector<8x32xf32>
    %93 = math.tanh %92 : vector<8x32xf32>
    %94 = arith.mulf %89, %93 : vector<8x32xf32>
    %c3_i32 = arith.constant 3 : i32
    %95 = arith.index_cast %c3_i32 : i32 to index
    %c0_24 = arith.constant 0 : index
    %c0_25 = arith.constant 0 : index
    %96 = vector.load %arg0[%95, %c0_24, %c0_25] : memref<8x8x128xf32, #tpu.memory_space<vmem>>, vector<1x8x128xf32>
    %97 = vector.shape_cast %96 : vector<1x8x128xf32> to vector<8x128xf32>
    %cst_26 = arith.constant dense<0.000000e+00> : vector<8x128xf32>
    %98 = tpu.matmul %94, %0, %cst_26 {dimension_numbers = #tpu.dot_dimension_numbers<[1], [0], [0], [1], [0, 0, 1, 1], [], []>} : vector<8x32xf32>, vector<32x128xf32>, vector<8x128xf32> -> vector<8x128xf32>
    %99 = arith.addf %97, %98 : vector<8x128xf32>
    %100 = vector.extract_strided_slice %99 {offsets = [0, 0], sizes = [8, 32], strides = [1, 1]} : vector<8x128xf32> to vector<8x32xf32>
    %101 = arith.negf %100 : vector<8x32xf32>
    %102 = math.exp %101 : vector<8x32xf32>
    %cst_27 = arith.constant 1.000000e+00 : f32
    %103 = vector.broadcast %cst_27 : f32 to vector<8x32xf32>
    %104 = arith.addf %103, %102 : vector<8x32xf32>
    %105 = arith.divf %103, %104 : vector<8x32xf32>
    %106 = vector.extract_strided_slice %99 {offsets = [0, 32], sizes = [8, 32], strides = [1, 1]} : vector<8x128xf32> to vector<8x32xf32>
    %107 = arith.negf %106 : vector<8x32xf32>
    %108 = math.exp %107 : vector<8x32xf32>
    %cst_28 = arith.constant 1.000000e+00 : f32
    %109 = vector.broadcast %cst_28 : f32 to vector<8x32xf32>
    %110 = arith.addf %109, %108 : vector<8x32xf32>
    %111 = arith.divf %109, %110 : vector<8x32xf32>
    %112 = vector.extract_strided_slice %99 {offsets = [0, 64], sizes = [8, 32], strides = [1, 1]} : vector<8x128xf32> to vector<8x32xf32>
    %113 = math.tanh %112 : vector<8x32xf32>
    %114 = vector.extract_strided_slice %99 {offsets = [0, 96], sizes = [8, 32], strides = [1, 1]} : vector<8x128xf32> to vector<8x32xf32>
    %115 = arith.negf %114 : vector<8x32xf32>
    %116 = math.exp %115 : vector<8x32xf32>
    %cst_29 = arith.constant 1.000000e+00 : f32
    %117 = vector.broadcast %cst_29 : f32 to vector<8x32xf32>
    %118 = arith.addf %117, %116 : vector<8x32xf32>
    %119 = arith.divf %117, %118 : vector<8x32xf32>
    %120 = arith.mulf %111, %92 : vector<8x32xf32>
    %121 = arith.mulf %105, %113 : vector<8x32xf32>
    %122 = arith.addf %120, %121 : vector<8x32xf32>
    %123 = math.tanh %122 : vector<8x32xf32>
    %124 = arith.mulf %119, %123 : vector<8x32xf32>
    %c4_i32 = arith.constant 4 : i32
    %125 = arith.index_cast %c4_i32 : i32 to index
    %c0_30 = arith.constant 0 : index
    %c0_31 = arith.constant 0 : index
    %126 = vector.load %arg0[%125, %c0_30, %c0_31] : memref<8x8x128xf32, #tpu.memory_space<vmem>>, vector<1x8x128xf32>
    %127 = vector.shape_cast %126 : vector<1x8x128xf32> to vector<8x128xf32>
    %cst_32 = arith.constant dense<0.000000e+00> : vector<8x128xf32>
    %128 = tpu.matmul %124, %0, %cst_32 {dimension_numbers = #tpu.dot_dimension_numbers<[1], [0], [0], [1], [0, 0, 1, 1], [], []>} : vector<8x32xf32>, vector<32x128xf32>, vector<8x128xf32> -> vector<8x128xf32>
    %129 = arith.addf %127, %128 : vector<8x128xf32>
    %130 = vector.extract_strided_slice %129 {offsets = [0, 0], sizes = [8, 32], strides = [1, 1]} : vector<8x128xf32> to vector<8x32xf32>
    %131 = arith.negf %130 : vector<8x32xf32>
    %132 = math.exp %131 : vector<8x32xf32>
    %cst_33 = arith.constant 1.000000e+00 : f32
    %133 = vector.broadcast %cst_33 : f32 to vector<8x32xf32>
    %134 = arith.addf %133, %132 : vector<8x32xf32>
    %135 = arith.divf %133, %134 : vector<8x32xf32>
    %136 = vector.extract_strided_slice %129 {offsets = [0, 32], sizes = [8, 32], strides = [1, 1]} : vector<8x128xf32> to vector<8x32xf32>
    %137 = arith.negf %136 : vector<8x32xf32>
    %138 = math.exp %137 : vector<8x32xf32>
    %cst_34 = arith.constant 1.000000e+00 : f32
    %139 = vector.broadcast %cst_34 : f32 to vector<8x32xf32>
    %140 = arith.addf %139, %138 : vector<8x32xf32>
    %141 = arith.divf %139, %140 : vector<8x32xf32>
    %142 = vector.extract_strided_slice %129 {offsets = [0, 64], sizes = [8, 32], strides = [1, 1]} : vector<8x128xf32> to vector<8x32xf32>
    %143 = math.tanh %142 : vector<8x32xf32>
    %144 = vector.extract_strided_slice %129 {offsets = [0, 96], sizes = [8, 32], strides = [1, 1]} : vector<8x128xf32> to vector<8x32xf32>
    %145 = arith.negf %144 : vector<8x32xf32>
    %146 = math.exp %145 : vector<8x32xf32>
    %cst_35 = arith.constant 1.000000e+00 : f32
    %147 = vector.broadcast %cst_35 : f32 to vector<8x32xf32>
    %148 = arith.addf %147, %146 : vector<8x32xf32>
    %149 = arith.divf %147, %148 : vector<8x32xf32>
    %150 = arith.mulf %141, %122 : vector<8x32xf32>
    %151 = arith.mulf %135, %143 : vector<8x32xf32>
    %152 = arith.addf %150, %151 : vector<8x32xf32>
    %153 = math.tanh %152 : vector<8x32xf32>
    %154 = arith.mulf %149, %153 : vector<8x32xf32>
    %c5_i32 = arith.constant 5 : i32
    %155 = arith.index_cast %c5_i32 : i32 to index
    %c0_36 = arith.constant 0 : index
    %c0_37 = arith.constant 0 : index
    %156 = vector.load %arg0[%155, %c0_36, %c0_37] : memref<8x8x128xf32, #tpu.memory_space<vmem>>, vector<1x8x128xf32>
    %157 = vector.shape_cast %156 : vector<1x8x128xf32> to vector<8x128xf32>
    %cst_38 = arith.constant dense<0.000000e+00> : vector<8x128xf32>
    %158 = tpu.matmul %154, %0, %cst_38 {dimension_numbers = #tpu.dot_dimension_numbers<[1], [0], [0], [1], [0, 0, 1, 1], [], []>} : vector<8x32xf32>, vector<32x128xf32>, vector<8x128xf32> -> vector<8x128xf32>
    %159 = arith.addf %157, %158 : vector<8x128xf32>
    %160 = vector.extract_strided_slice %159 {offsets = [0, 0], sizes = [8, 32], strides = [1, 1]} : vector<8x128xf32> to vector<8x32xf32>
    %161 = arith.negf %160 : vector<8x32xf32>
    %162 = math.exp %161 : vector<8x32xf32>
    %cst_39 = arith.constant 1.000000e+00 : f32
    %163 = vector.broadcast %cst_39 : f32 to vector<8x32xf32>
    %164 = arith.addf %163, %162 : vector<8x32xf32>
    %165 = arith.divf %163, %164 : vector<8x32xf32>
    %166 = vector.extract_strided_slice %159 {offsets = [0, 32], sizes = [8, 32], strides = [1, 1]} : vector<8x128xf32> to vector<8x32xf32>
    %167 = arith.negf %166 : vector<8x32xf32>
    %168 = math.exp %167 : vector<8x32xf32>
    %cst_40 = arith.constant 1.000000e+00 : f32
    %169 = vector.broadcast %cst_40 : f32 to vector<8x32xf32>
    %170 = arith.addf %169, %168 : vector<8x32xf32>
    %171 = arith.divf %169, %170 : vector<8x32xf32>
    %172 = vector.extract_strided_slice %159 {offsets = [0, 64], sizes = [8, 32], strides = [1, 1]} : vector<8x128xf32> to vector<8x32xf32>
    %173 = math.tanh %172 : vector<8x32xf32>
    %174 = vector.extract_strided_slice %159 {offsets = [0, 96], sizes = [8, 32], strides = [1, 1]} : vector<8x128xf32> to vector<8x32xf32>
    %175 = arith.negf %174 : vector<8x32xf32>
    %176 = math.exp %175 : vector<8x32xf32>
    %cst_41 = arith.constant 1.000000e+00 : f32
    %177 = vector.broadcast %cst_41 : f32 to vector<8x32xf32>
    %178 = arith.addf %177, %176 : vector<8x32xf32>
    %179 = arith.divf %177, %178 : vector<8x32xf32>
    %180 = arith.mulf %171, %152 : vector<8x32xf32>
    %181 = arith.mulf %165, %173 : vector<8x32xf32>
    %182 = arith.addf %180, %181 : vector<8x32xf32>
    %183 = math.tanh %182 : vector<8x32xf32>
    %184 = arith.mulf %179, %183 : vector<8x32xf32>
    %c6_i32 = arith.constant 6 : i32
    %185 = arith.index_cast %c6_i32 : i32 to index
    %c0_42 = arith.constant 0 : index
    %c0_43 = arith.constant 0 : index
    %186 = vector.load %arg0[%185, %c0_42, %c0_43] : memref<8x8x128xf32, #tpu.memory_space<vmem>>, vector<1x8x128xf32>
    %187 = vector.shape_cast %186 : vector<1x8x128xf32> to vector<8x128xf32>
    %cst_44 = arith.constant dense<0.000000e+00> : vector<8x128xf32>
    %188 = tpu.matmul %184, %0, %cst_44 {dimension_numbers = #tpu.dot_dimension_numbers<[1], [0], [0], [1], [0, 0, 1, 1], [], []>} : vector<8x32xf32>, vector<32x128xf32>, vector<8x128xf32> -> vector<8x128xf32>
    %189 = arith.addf %187, %188 : vector<8x128xf32>
    %190 = vector.extract_strided_slice %189 {offsets = [0, 0], sizes = [8, 32], strides = [1, 1]} : vector<8x128xf32> to vector<8x32xf32>
    %191 = arith.negf %190 : vector<8x32xf32>
    %192 = math.exp %191 : vector<8x32xf32>
    %cst_45 = arith.constant 1.000000e+00 : f32
    %193 = vector.broadcast %cst_45 : f32 to vector<8x32xf32>
    %194 = arith.addf %193, %192 : vector<8x32xf32>
    %195 = arith.divf %193, %194 : vector<8x32xf32>
    %196 = vector.extract_strided_slice %189 {offsets = [0, 32], sizes = [8, 32], strides = [1, 1]} : vector<8x128xf32> to vector<8x32xf32>
    %197 = arith.negf %196 : vector<8x32xf32>
    %198 = math.exp %197 : vector<8x32xf32>
    %cst_46 = arith.constant 1.000000e+00 : f32
    %199 = vector.broadcast %cst_46 : f32 to vector<8x32xf32>
    %200 = arith.addf %199, %198 : vector<8x32xf32>
    %201 = arith.divf %199, %200 : vector<8x32xf32>
    %202 = vector.extract_strided_slice %189 {offsets = [0, 64], sizes = [8, 32], strides = [1, 1]} : vector<8x128xf32> to vector<8x32xf32>
    %203 = math.tanh %202 : vector<8x32xf32>
    %204 = vector.extract_strided_slice %189 {offsets = [0, 96], sizes = [8, 32], strides = [1, 1]} : vector<8x128xf32> to vector<8x32xf32>
    %205 = arith.negf %204 : vector<8x32xf32>
    %206 = math.exp %205 : vector<8x32xf32>
    %cst_47 = arith.constant 1.000000e+00 : f32
    %207 = vector.broadcast %cst_47 : f32 to vector<8x32xf32>
    %208 = arith.addf %207, %206 : vector<8x32xf32>
    %209 = arith.divf %207, %208 : vector<8x32xf32>
    %210 = arith.mulf %201, %182 : vector<8x32xf32>
    %211 = arith.mulf %195, %203 : vector<8x32xf32>
    %212 = arith.addf %210, %211 : vector<8x32xf32>
    %213 = math.tanh %212 : vector<8x32xf32>
    %214 = arith.mulf %209, %213 : vector<8x32xf32>
    %c7_i32 = arith.constant 7 : i32
    %215 = arith.index_cast %c7_i32 : i32 to index
    %c0_48 = arith.constant 0 : index
    %c0_49 = arith.constant 0 : index
    %216 = vector.load %arg0[%215, %c0_48, %c0_49] : memref<8x8x128xf32, #tpu.memory_space<vmem>>, vector<1x8x128xf32>
    %217 = vector.shape_cast %216 : vector<1x8x128xf32> to vector<8x128xf32>
    %cst_50 = arith.constant dense<0.000000e+00> : vector<8x128xf32>
    %218 = tpu.matmul %214, %0, %cst_50 {dimension_numbers = #tpu.dot_dimension_numbers<[1], [0], [0], [1], [0, 0, 1, 1], [], []>} : vector<8x32xf32>, vector<32x128xf32>, vector<8x128xf32> -> vector<8x128xf32>
    %219 = arith.addf %217, %218 : vector<8x128xf32>
    %220 = vector.extract_strided_slice %219 {offsets = [0, 0], sizes = [8, 32], strides = [1, 1]} : vector<8x128xf32> to vector<8x32xf32>
    %221 = arith.negf %220 : vector<8x32xf32>
    %222 = math.exp %221 : vector<8x32xf32>
    %cst_51 = arith.constant 1.000000e+00 : f32
    %223 = vector.broadcast %cst_51 : f32 to vector<8x32xf32>
    %224 = arith.addf %223, %222 : vector<8x32xf32>
    %225 = arith.divf %223, %224 : vector<8x32xf32>
    %226 = vector.extract_strided_slice %219 {offsets = [0, 32], sizes = [8, 32], strides = [1, 1]} : vector<8x128xf32> to vector<8x32xf32>
    %227 = arith.negf %226 : vector<8x32xf32>
    %228 = math.exp %227 : vector<8x32xf32>
    %cst_52 = arith.constant 1.000000e+00 : f32
    %229 = vector.broadcast %cst_52 : f32 to vector<8x32xf32>
    %230 = arith.addf %229, %228 : vector<8x32xf32>
    %231 = arith.divf %229, %230 : vector<8x32xf32>
    %232 = vector.extract_strided_slice %219 {offsets = [0, 64], sizes = [8, 32], strides = [1, 1]} : vector<8x128xf32> to vector<8x32xf32>
    %233 = math.tanh %232 : vector<8x32xf32>
    %234 = vector.extract_strided_slice %219 {offsets = [0, 96], sizes = [8, 32], strides = [1, 1]} : vector<8x128xf32> to vector<8x32xf32>
    %235 = arith.negf %234 : vector<8x32xf32>
    %236 = math.exp %235 : vector<8x32xf32>
    %cst_53 = arith.constant 1.000000e+00 : f32
    %237 = vector.broadcast %cst_53 : f32 to vector<8x32xf32>
    %238 = arith.addf %237, %236 : vector<8x32xf32>
    %239 = arith.divf %237, %238 : vector<8x32xf32>
    %240 = arith.mulf %231, %212 : vector<8x32xf32>
    %241 = arith.mulf %225, %233 : vector<8x32xf32>
    %242 = arith.addf %240, %241 : vector<8x32xf32>
    %243 = math.tanh %242 : vector<8x32xf32>
    %244 = arith.mulf %239, %243 : vector<8x32xf32>
    %c8_i32 = arith.constant 8 : i32
    %cst_54 = arith.constant dense<0.000000e+00> : vector<8x1xf32>
    %245 = tpu.matmul %244, %1, %cst_54 {dimension_numbers = #tpu.dot_dimension_numbers<[1], [0], [0], [1], [0, 0, 1, 1], [], []>} : vector<8x32xf32>, vector<32x1xf32>, vector<8x1xf32> -> vector<8x1xf32>
    %246 = vector.broadcast %2 : vector<1x1xf32> to vector<8x1xf32>
    %247 = arith.addf %245, %246 : vector<8x1xf32>
    %248 = arith.negf %247 : vector<8x1xf32>
    %249 = math.exp %248 : vector<8x1xf32>
    %cst_55 = arith.constant 1.000000e+00 : f32
    %250 = vector.broadcast %cst_55 : f32 to vector<8x1xf32>
    %251 = arith.addf %250, %249 : vector<8x1xf32>
    %252 = arith.divf %250, %251 : vector<8x1xf32>
    %c0_56 = arith.constant 0 : index
    %c0_57 = arith.constant 0 : index
    %253 = vector.load %arg4[%c0_56, %c0_57] : memref<8x1xf32, #tpu.memory_space<vmem>>, vector<8x1xf32>
    tpu.vector_store %arg4[%c0_56, %c0_57], %252 {strides = array<i32>} : memref<8x1xf32, #tpu.memory_space<vmem>>, vector<8x1xf32>,
    return
  }
}

</mosaic_0001>

<bundles_post_ra>
// kernel: lstm_model_forward.1
= control target key start
LH: loop header
LB: loop body
LE: loop exit
PB: predicated region body
PF: predicated region fallthrough
CT: control target
= control target key end

     0   :  { %v1231_v0 = vmov 0.0|0.0   ;;  %vm1232_vm0 = vmmov 0   ;;  %v1233_v4 = vmov 0.0   ;;  %s1234_s24 = smov 64   ;;  %s1235_s25 = smov 32   ;;  %vm29_vm1 = vcmask 261120   ;;  %s1412_s1 = inlined_call_operand.vmem [shape: f32[32,128], index: 1, kind: input, shape index: {}]   ;;  %s1413_s0 = inlined_call_operand.vmem [shape: f32[8,8,128], index: 0, kind: input, shape index: {}]   ;;  %s1414_s2 = inlined_call_operand.vmem [shape: f32[32,1], index: 2, kind: input, shape index: {}]   ;;  %s1415_s3 = inlined_call_operand.<no memory space> [shape: f32[1,1], index: 3, kind: input, shape index: {}]   ;;  %s1416_s4 = inlined_call_operand.vmem [shape: f32[8,1], index: 4, kind: output, shape index: {}]  }
   0x1   :  { %1104 = vmatprep.subr.bf16.mxu0 %v1231_v0  ;;  %v19_v1 = vld [vmem:[%s1412_s1] sm:$0xff]  ;;  %v20_v2 = vld [vmem:[%s1412_s1 + $0x8] sm:$0xff]  ;;  %v21_v3 = vld [vmem:[%s1412_s1 + $0x10] sm:$0xff]  ;;  %1013 = vmatprep.mubr.msk.f32.mxu0 %vm1232_vm0, %v1233_v4  ;;  %vm929_vm2 = vcmask 7168  }
   0x2   :  { %v1273_v5 = vpack.c.bf16 %v20_v2, %v19_v1  ;;  %v22_v6 = vld [vmem:[%s1412_s1 + $0x18] sm:$0xff]  ;;  %1110 = vmatprep.subr.bf16.mxu1 %v1231_v0  ;;  %1024 = vmatprep.mubr.msk.f32.mxu1 %vm1232_vm0, %v1233_v4  ;;  %v28_v8 = vld [vmem:[%s1413_s0] sm:$0xff]  ;;  %v936_v26 = vld [vmem:[%s1413_s0 + $0x8] sm:$0xff] }
   0x3   :  { %v1282_v7 = vpack.c.bf16 %v22_v6, %v21_v3  ;;  %v939_v44 = vld [vmem:[%s1413_s0 + $0x10] sm:$0xff]  ;;  %v942_v62 = vld [vmem:[%s1413_s0 + $0x18] sm:$0xff] }
   0x4   :  { %1106 = vmatpush3.bf16.msra.mxu0 %v1273_v5  ;;  %1112 = vmatpush3.bf16.msra.mxu1 %v1273_v5 }
   0x5   :  { %1107 = vmatprep.subr.bf16.mxu0 %v1231_v0  ;;  %1113 = vmatprep.subr.bf16.mxu1 %v1231_v0 }
   0x8   :  { %1109 = vmatpush3.bf16.msra.mxu0 %v1282_v7  ;;  %1115 = vmatpush3.bf16.msra.mxu1 %v1282_v7 }
   0x9   :  { %1116 = vmatprep.subr.bf16.mxu0 %v1231_v0  ;;  %1122 = vmatprep.subr.bf16.mxu1 %v1231_v0 }
   0xb   :  { %1014 = vmatmul.mubr.f32.vlgmr.msra.gmra.mrb[0].mxu0 %v1233_v4 }
   0xc   :  { %1118 = vmatpush3.bf16.msra.mxu0 %v1273_v5  ;;  %1035 = vmatprep.mubr.msk.f32.mxu0 %vm1232_vm0, %v1233_v4 }
   0xd   :  { %1119 = vmatprep.subr.bf16.mxu0 %v1231_v0 }
  0x10   :  { %1121 = vmatpush3.bf16.msra.mxu0 %v1282_v7 }
  0x11   :  { %1128 = vmatprep.subr.bf16.mxu0 %v1231_v0 }
  0xde   :  { %v99_v9 = vpop.f32.mrb[0].mxu0 }
  0xdf   :  { %v103_v10 = vadd.f32 %v99_v9, %v28_v8  ;;  %v1015_v11 = vpop.f32.mrb[1].mxu0 }
  0xe1   :  { %1163 = vtanh.f32 %v103_v10  ;;  %v935_v13 = vmul.f32 -1.442695, %v103_v10 }
  0xe3   :  { %1165 = vpow2.f32 %v935_v13 }
  0xeb   :  { %v1164_v12 = vpop.eup %1163 }
  0xec   :  { %113 = vrot.lane.b32.xlu0 %v1164_v12, %s1234_s24 }
  0xed   :  { %v1166_v14 = vpop.eup %1165 }
  0xee   :  { %v107_v15 = vadd.f32 1.0, %v1166_v14 }
  0xf0   :  { %1167 = vrcp.f32 %v107_v15 }
  0xfa   :  { %v1168_v16 = vpop.eup %1167 }
  0xfb   :  { %v111_v19 = vmul.f32 0.0, %v1168_v16 }
 0x15e   :  { %v114_v17 = vpop.permute.xlu0 %113 }
 0x15f   :  { %v116_v18 = vmul.f32 %v1168_v16, %v114_v17 }
 0x161   :  { %118 = vrot.lane.b32.xlu0 %v116_v18, %s1235_s25 }
 0x1d3   :  { %v119_v20 = vpop.permute.xlu0 %118 }
 0x1d4   :  { %v121_v21 = vadd.f32 %v119_v20, %v111_v19  ;;  %v945_v20 = vld [vmem:[%s1413_s0 + $0x20] sm:$0xff] }
 0x1d6   :  { %1169 = vtanh.f32 %v121_v21 }
 0x1e0   :  { %v1170_v22 = vpop.eup %1169 }
 0x1e1   :  { %124 = vrot.lane.b32.xlu1 %v1170_v22, %s1234_s24 }
 0x253   :  { %v125_v23 = vpop.permute.xlu1 %124 }
 0x254   :  { %v127_v24 = vmul.f32 %v1168_v16, %v125_v23 }
 0x256   :  { %131 = vrot.lane.b32.xlu1 %v127_v24, %s1235_s25 }
 0x2c8   :  { %v132_v25 = vpop.permute.xlu1 %131 }
 0x2c9   :  { %1025 = vmatmul.mubr.msk.f32.vlgmr.msra.gmra.mrb[0].mxu1 %vm29_vm1, %v132_v25 }
 0x2ca   :  { %1124 = vmatpush3.bf16.msra.mxu1 %v1273_v5  ;;  %1046 = vmatprep.mubr.msk.f32.mxu1 %vm1232_vm0, %v1233_v4 }
 0x2cb   :  { %1125 = vmatprep.subr.bf16.mxu1 %v1231_v0 }
 0x2ce   :  { %1127 = vmatpush3.bf16.msra.mxu1 %v1282_v7 }
 0x2cf   :  { %1134 = vmatprep.subr.bf16.mxu1 %v1231_v0 }
 0x39c   :  { %v201_v27 = vpop.f32.mrb[0].mxu1 }
 0x39d   :  { %v205_v28 = vadd.f32 %v936_v26, %v201_v27  ;;  %v1026_v29 = vpop.f32.mrb[1].mxu1 }
 0x39f   :  { %1171 = vtanh.f32 %v205_v28  ;;  %v938_v31 = vmul.f32 -1.442695, %v205_v28 }
 0x3a1   :  { %1173 = vpow2.f32 %v938_v31 }
 0x3a9   :  { %v1172_v30 = vpop.eup %1171 }
 0x3aa   :  { %215 = vrot.lane.b32.xlu0 %v1172_v30, %s1234_s24 }
 0x3ab   :  { %v1174_v32 = vpop.eup %1173 }
 0x3ac   :  { %v209_v33 = vadd.f32 1.0, %v1174_v32 }
 0x3ae   :  { %1175 = vrcp.f32 %v209_v33 }
 0x3b8   :  { %v1176_v34 = vpop.eup %1175 }
 0x3b9   :  { %v213_v37 = vmul.f32 %v1176_v34, %v121_v21 }
 0x41c   :  { %v216_v35 = vpop.permute.xlu0 %215 }
 0x41d   :  { %v218_v36 = vmul.f32 %v1176_v34, %v216_v35 }
 0x41f   :  { %220 = vrot.lane.b32.xlu1 %v218_v36, %s1235_s25 }
 0x491   :  { %v221_v38 = vpop.permute.xlu1 %220 }
 0x492   :  { %v223_v39 = vadd.f32 %v221_v38, %v213_v37  ;;  %v948_v38 = vld [vmem:[%s1413_s0 + $0x28] sm:$0xff] }
 0x494   :  { %1177 = vtanh.f32 %v223_v39 }
 0x49e   :  { %v1178_v40 = vpop.eup %1177 }
 0x49f   :  { %226 = vrot.lane.b32.xlu0 %v1178_v40, %s1234_s24 }
 0x511   :  { %v227_v41 = vpop.permute.xlu0 %226 }
 0x512   :  { %v229_v42 = vmul.f32 %v1176_v34, %v227_v41 }
 0x514   :  { %233 = vrot.lane.b32.xlu1 %v229_v42, %s1235_s25 }
 0x586   :  { %v234_v43 = vpop.permute.xlu1 %233 }
 0x587   :  { %1036 = vmatmul.mubr.msk.f32.vlgmr.msra.gmra.mrb[2].mxu0 %vm29_vm1, %v234_v43 }
 0x588   :  { %1130 = vmatpush3.bf16.msra.mxu0 %v1273_v5  ;;  %1057 = vmatprep.mubr.msk.f32.mxu0 %vm1232_vm0, %v1233_v4 }
 0x589   :  { %1131 = vmatprep.subr.bf16.mxu0 %v1231_v0 }
 0x58c   :  { %1133 = vmatpush3.bf16.msra.mxu0 %v1282_v7 }
 0x58d   :  { %1140 = vmatprep.subr.bf16.mxu0 %v1231_v0 }
 0x65a   :  { %v303_v45 = vpop.f32.mrb[2].mxu0 }
 0x65b   :  { %v307_v46 = vadd.f32 %v939_v44, %v303_v45  ;;  %v1037_v47 = vpop.f32.mrb[3].mxu0 }
 0x65d   :  { %1179 = vtanh.f32 %v307_v46  ;;  %v941_v49 = vmul.f32 -1.442695, %v307_v46 }
 0x65f   :  { %1181 = vpow2.f32 %v941_v49 }
 0x667   :  { %v1180_v48 = vpop.eup %1179 }
 0x668   :  { %317 = vrot.lane.b32.xlu0 %v1180_v48, %s1234_s24 }
 0x669   :  { %v1182_v50 = vpop.eup %1181 }
 0x66a   :  { %v311_v51 = vadd.f32 1.0, %v1182_v50 }
 0x66c   :  { %1183 = vrcp.f32 %v311_v51 }
 0x676   :  { %v1184_v52 = vpop.eup %1183 }
 0x677   :  { %v315_v55 = vmul.f32 %v1184_v52, %v223_v39 }
 0x6da   :  { %v318_v53 = vpop.permute.xlu0 %317 }
 0x6db   :  { %v320_v54 = vmul.f32 %v1184_v52, %v318_v53 }
 0x6dd   :  { %322 = vrot.lane.b32.xlu1 %v320_v54, %s1235_s25  ;;  %v951_v54 = vld [vmem:[%s1413_s0 + $0x30] sm:$0xff] }
 0x74f   :  { %v323_v56 = vpop.permute.xlu1 %322 }
 0x750   :  { %v325_v57 = vadd.f32 %v323_v56, %v315_v55 }
 0x752   :  { %1185 = vtanh.f32 %v325_v57 }
 0x75c   :  { %v1186_v58 = vpop.eup %1185 }
 0x75d   :  { %328 = vrot.lane.b32.xlu0 %v1186_v58, %s1234_s24 }
 0x7cf   :  { %v329_v59 = vpop.permute.xlu0 %328 }
 0x7d0   :  { %v331_v60 = vmul.f32 %v1184_v52, %v329_v59 }
 0x7d2   :  { %335 = vrot.lane.b32.xlu1 %v331_v60, %s1235_s25 }
 0x844   :  { %v336_v61 = vpop.permute.xlu1 %335 }
 0x845   :  { %1047 = vmatmul.mubr.msk.f32.vlgmr.msra.gmra.mrb[2].mxu1 %vm29_vm1, %v336_v61 }
 0x846   :  { %1136 = vmatpush3.bf16.msra.mxu1 %v1273_v5  ;;  %1068 = vmatprep.mubr.msk.f32.mxu1 %vm1232_vm0, %v1233_v4 }
 0x847   :  { %1137 = vmatprep.subr.bf16.mxu1 %v1231_v0 }
 0x84a   :  { %1139 = vmatpush3.bf16.msra.mxu1 %v1282_v7 }
 0x84b   :  { %1146 = vmatprep.subr.bf16.mxu1 %v1231_v0 }
 0x918   :  { %v405_v63 = vpop.f32.mrb[2].mxu1 }
 0x919   :  { %v409_v1 = vadd.f32 %v942_v62, %v405_v63  ;;  %v1048_v2 = vpop.f32.mrb[3].mxu1 }
 0x91b   :  { %1187 = vtanh.f32 %v409_v1  ;;  %v944_v6 = vmul.f32 -1.442695, %v409_v1 }
 0x91d   :  { %1189 = vpow2.f32 %v944_v6 }
 0x925   :  { %v1188_v3 = vpop.eup %1187 }
 0x926   :  { %419 = vrot.lane.b32.xlu0 %v1188_v3, %s1234_s24 }
 0x927   :  { %v1190_v8 = vpop.eup %1189 }
 0x928   :  { %v413_v9 = vadd.f32 1.0, %v1190_v8 }
 0x92a   :  { %1191 = vrcp.f32 %v413_v9 }
 0x934   :  { %v1192_v10 = vpop.eup %1191 }
 0x935   :  { %v417_v13 = vmul.f32 %v1192_v10, %v325_v57 }
 0x998   :  { %v420_v11 = vpop.permute.xlu0 %419 }
 0x999   :  { %v422_v12 = vmul.f32 %v1192_v10, %v420_v11  ;;  %v954_v11 = vld [vmem:[%s1413_s0 + $0x38] sm:$0xff] }
 0x99b   :  { %424 = vrot.lane.b32.xlu1 %v422_v12, %s1235_s25 }
 0xa0d   :  { %v425_v14 = vpop.permute.xlu1 %424 }
 0xa0e   :  { %v427_v15 = vadd.f32 %v425_v14, %v417_v13 }
 0xa10   :  { %1193 = vtanh.f32 %v427_v15 }
 0xa1a   :  { %v1194_v16 = vpop.eup %1193 }
 0xa1b   :  { %430 = vrot.lane.b32.xlu0 %v1194_v16, %s1234_s24 }
 0xa8d   :  { %v431_v17 = vpop.permute.xlu0 %430 }
 0xa8e   :  { %v433_v18 = vmul.f32 %v1192_v10, %v431_v17 }
 0xa90   :  { %437 = vrot.lane.b32.xlu1 %v433_v18, %s1235_s25 }
 0xb02   :  { %v438_v19 = vpop.permute.xlu1 %437 }
 0xb03   :  { %1058 = vmatmul.mubr.msk.f32.vlgmr.msra.gmra.mrb[4].mxu0 %vm29_vm1, %v438_v19 }
 0xb04   :  { %1142 = vmatpush3.bf16.msra.mxu0 %v1273_v5  ;;  %1079 = vmatprep.mubr.msk.f32.mxu0 %vm1232_vm0, %v1233_v4 }
 0xb05   :  { %1143 = vmatprep.subr.bf16.mxu0 %v1231_v0 }
 0xb08   :  { %1145 = vmatpush3.bf16.msra.mxu0 %v1282_v7 }
 0xb09   :  { %1152 = vmatprep.subr.bf16.mxu0 %v1231_v0 }
 0xbd6   :  { %v507_v21 = vpop.f32.mrb[4].mxu0 }
 0xbd7   :  { %v511_v22 = vadd.f32 %v945_v20, %v507_v21  ;;  %v1059_v23 = vpop.f32.mrb[5].mxu0 }
 0xbd9   :  { %1195 = vtanh.f32 %v511_v22  ;;  %v947_v25 = vmul.f32 -1.442695, %v511_v22 }
 0xbdb   :  { %1197 = vpow2.f32 %v947_v25  ;;  %v23_v25 = vld [vmem:[%s1414_s2] sm:$0xff] }
 0xbe3   :  { %v1196_v24 = vpop.eup %1195 }
 0xbe4   :  { %521 = vrot.lane.b32.xlu0 %v1196_v24, %s1234_s24 }
 0xbe5   :  { %v1198_v26 = vpop.eup %1197 }
 0xbe6   :  { %v515_v27 = vadd.f32 1.0, %v1198_v26  ;;  %v24_v26 = vld [vmem:[%s1414_s2 + $0x8] sm:$0xff] }
 0xbe8   :  { %1199 = vrcp.f32 %v515_v27  ;;  %v25_v27 = vld [vmem:[%s1414_s2 + $0x10] sm:$0xff] }
 0xbf2   :  { %v1200_v28 = vpop.eup %1199 }
 0xbf3   :  { %v519_v31 = vmul.f32 %v1200_v28, %v427_v15 }
 0xc56   :  { %v522_v29 = vpop.permute.xlu0 %521 }
 0xc57   :  { %v524_v30 = vmul.f32 %v1200_v28, %v522_v29  ;;  %v26_v29 = vld [vmem:[%s1414_s2 + $0x18] sm:$0xff] }
 0xc59   :  { %526 = vrot.lane.b32.xlu1 %v524_v30, %s1235_s25  ;;  %v1156_v30 = vpack.c.bf16 %v26_v29, %v25_v27 }
 0xccb   :  { %v527_v32 = vpop.permute.xlu1 %526 }
 0xccc   :  { %v529_v33 = vadd.f32 %v527_v32, %v519_v31  ;;  %v9_v32 = vstv %s1415_s3 }
 0xccd   :  { %10 = vst [vmem:[#allocation2] sm:$0x1] %v9_v32 }
 0xcce   :  { %1201 = vtanh.f32 %v529_v33 }
 0xcd8   :  { %v1202_v34 = vpop.eup %1201 }
 0xcd9   :  { %532 = vrot.lane.b32.xlu0 %v1202_v34, %s1234_s24 }
 0xd4b   :  { %v533_v35 = vpop.permute.xlu0 %532 }
 0xd4c   :  { %v535_v36 = vmul.f32 %v1200_v28, %v533_v35  ;;  %v1153_v28 = vpack.c.bf16 %v24_v26, %v23_v25 }
 0xd4e   :  { %539 = vrot.lane.b32.xlu1 %v535_v36, %s1235_s25  ;;  %v957_v36 = vld [vmem:[#allocation2] ss:$0 sm:$0xff] }
 0xdc0   :  { %v540_v37 = vpop.permute.xlu1 %539 }
 0xdc1   :  { %1069 = vmatmul.mubr.msk.f32.vlgmr.msra.gmra.mrb[4].mxu1 %vm29_vm1, %v540_v37 }
 0xdc2   :  { %1148 = vmatpush3.bf16.msra.mxu1 %v1273_v5  ;;  %1090 = vmatprep.mubr.msk.f32.mxu1 %vm1232_vm0, %v1233_v4 }
 0xdc3   :  { %1149 = vmatprep.subr.bf16.mxu1 %v1231_v0 }
 0xdc6   :  { %1151 = vmatpush3.bf16.msra.mxu1 %v1282_v7 }
 0xe94   :  { %v609_v39 = vpop.f32.mrb[4].mxu1 }
 0xe95   :  { %v613_v40 = vadd.f32 %v948_v38, %v609_v39  ;;  %v1070_v41 = vpop.f32.mrb[5].mxu1 }
 0xe97   :  { %1203 = vtanh.f32 %v613_v40  ;;  %v950_v43 = vmul.f32 -1.442695, %v613_v40 }
 0xe99   :  { %1205 = vpow2.f32 %v950_v43 }
 0xea1   :  { %v1204_v42 = vpop.eup %1203 }
 0xea2   :  { %623 = vrot.lane.b32.xlu0 %v1204_v42, %s1234_s24 }
 0xea3   :  { %v1206_v5 = vpop.eup %1205 }
 0xea4   :  { %v617_v44 = vadd.f32 1.0, %v1206_v5 }
 0xea6   :  { %1207 = vrcp.f32 %v617_v44 }
 0xeb0   :  { %v1208_v45 = vpop.eup %1207 }
 0xeb1   :  { %v621_v7 = vmul.f32 %v1208_v45, %v529_v33 }
 0xf14   :  { %v624_v46 = vpop.permute.xlu0 %623 }
 0xf15   :  { %v626_v47 = vmul.f32 %v1208_v45, %v624_v46 }
 0xf17   :  { %628 = vrot.lane.b32.xlu1 %v626_v47, %s1235_s25 }
 0xf89   :  { %v629_v48 = vpop.permute.xlu1 %628 }
 0xf8a   :  { %v631_v49 = vadd.f32 %v629_v48, %v621_v7 }
 0xf8c   :  { %1209 = vtanh.f32 %v631_v49 }
 0xf96   :  { %v1210_v50 = vpop.eup %1209 }
 0xf97   :  { %634 = vrot.lane.b32.xlu0 %v1210_v50, %s1234_s24 }
0x1009   :  { %v635_v51 = vpop.permute.xlu0 %634 }
0x100a   :  { %v637_v52 = vmul.f32 %v1208_v45, %v635_v51 }
0x100c   :  { %641 = vrot.lane.b32.xlu1 %v637_v52, %s1235_s25 }
0x107e   :  { %v642_v53 = vpop.permute.xlu1 %641 }
0x107f   :  { %1080 = vmatmul.mubr.msk.f32.vlgmr.msra.gmra.mrb[6].mxu0 %vm29_vm1, %v642_v53 }
0x1080   :  { %1101 = vmatprep.mubr.msk.f32.mxu0 %vm1232_vm0, %v1233_v4  ;;  %1154 = vmatpush3.bf16.msra.mxu0 %v1153_v28 }
0x1081   :  { %1155 = vmatprep.subr.bf16.mxu0 %v1231_v0 }
0x1084   :  { %1157 = vmatpush3.bf16.msra.mxu0 %v1156_v30 }
0x1152   :  { %v711_v55 = vpop.f32.mrb[6].mxu0 }
0x1153   :  { %v715_v56 = vadd.f32 %v951_v54, %v711_v55  ;;  %v1081_v57 = vpop.f32.mrb[7].mxu0 }
0x1155   :  { %1211 = vtanh.f32 %v715_v56  ;;  %v953_v59 = vmul.f32 -1.442695, %v715_v56 }
0x1157   :  { %1213 = vpow2.f32 %v953_v59 }
0x115f   :  { %v1212_v58 = vpop.eup %1211 }
0x1160   :  { %725 = vrot.lane.b32.xlu0 %v1212_v58, %s1234_s24 }
0x1161   :  { %v1214_v60 = vpop.eup %1213 }
0x1162   :  { %v719_v61 = vadd.f32 1.0, %v1214_v60 }
0x1164   :  { %1215 = vrcp.f32 %v719_v61 }
0x116e   :  { %v1216_v62 = vpop.eup %1215 }
0x116f   :  { %v723_v4 = vmul.f32 %v1216_v62, %v631_v49 }
0x11d2   :  { %v726_v63 = vpop.permute.xlu0 %725 }
0x11d3   :  { %v728_v1 = vmul.f32 %v1216_v62, %v726_v63 }
0x11d5   :  { %730 = vrot.lane.b32.xlu1 %v728_v1, %s1235_s25 }
0x1247   :  { %v731_v2 = vpop.permute.xlu1 %730 }
0x1248   :  { %v733_v3 = vadd.f32 %v731_v2, %v723_v4 }
0x124a   :  { %1217 = vtanh.f32 %v733_v3 }
0x1254   :  { %v1218_v6 = vpop.eup %1217 }
0x1255   :  { %736 = vrot.lane.b32.xlu0 %v1218_v6, %s1234_s24 }
0x12c7   :  { %v737_v8 = vpop.permute.xlu0 %736 }
0x12c8   :  { %v739_v9 = vmul.f32 %v1216_v62, %v737_v8 }
0x12ca   :  { %743 = vrot.lane.b32.xlu1 %v739_v9, %s1235_s25 }
0x133c   :  { %v744_v10 = vpop.permute.xlu1 %743 }
0x133d   :  { %1091 = vmatmul.mubr.msk.f32.vlgmr.msra.gmra.mrb[6].mxu1 %vm29_vm1, %v744_v10 }
0x1410   :  { %v813_v12 = vpop.f32.mrb[6].mxu1 }
0x1411   :  { %v817_v13 = vadd.f32 %v954_v11, %v813_v12  ;;  %v1092_v14 = vpop.f32.mrb[7].mxu1 }
0x1413   :  { %1219 = vtanh.f32 %v817_v13  ;;  %v956_v16 = vmul.f32 -1.442695, %v817_v13 }
0x1415   :  { %1221 = vpow2.f32 %v956_v16 }
0x141d   :  { %v1220_v15 = vpop.eup %1219 }
0x141e   :  { %827 = vrot.lane.b32.xlu0 %v1220_v15, %s1234_s24 }
0x141f   :  { %v1222_v17 = vpop.eup %1221 }
0x1420   :  { %v821_v18 = vadd.f32 1.0, %v1222_v17 }
0x1422   :  { %1223 = vrcp.f32 %v821_v18 }
0x142c   :  { %v1224_v19 = vpop.eup %1223 }
0x142d   :  { %v825_v22 = vmul.f32 %v1224_v19, %v733_v3 }
0x1490   :  { %v828_v20 = vpop.permute.xlu0 %827 }
0x1491   :  { %v830_v21 = vmul.f32 %v1224_v19, %v828_v20 }
0x1493   :  { %832 = vrot.lane.b32.xlu1 %v830_v21, %s1235_s25 }
0x1505   :  { %v833_v23 = vpop.permute.xlu1 %832 }
0x1506   :  { %v835_v24 = vadd.f32 %v833_v23, %v825_v22 }
0x1508   :  { %1225 = vtanh.f32 %v835_v24 }
0x1512   :  { %v1226_v31 = vpop.eup %1225 }
0x1513   :  { %838 = vrot.lane.b32.xlu0 %v1226_v31, %s1234_s24 }
0x1585   :  { %v839_v33 = vpop.permute.xlu0 %838 }
0x1586   :  { %v841_v34 = vmul.f32 %v1224_v19, %v839_v33 }
0x1588   :  { %849 = vrot.lane.b32.xlu1 %v841_v34, %s1235_s25 }
0x15fa   :  { %v850_v35 = vpop.permute.xlu1 %849 }
0x15fb   :  { %1102 = vmatmul.mubr.msk.f32.vlgmr.msra.gmra.mrb[8].mxu0 %vm29_vm1, %v850_v35 }
0x16ce   :  { %v919_v37 = vpop.f32.mrb[8].mxu0 }
0x16cf   :  { %v920_v38 = vadd.f32 %v957_v36, %v919_v37  ;;  %v1103_v0 = vpop.f32.mrb[9].mxu0 }
0x16d1   :  { %v959_v39 = vmul.f32 -1.442695, %v920_v38 }
0x16d3   :  { %1227 = vpow2.f32 %v959_v39 }
0x16dd   :  { %v1228_v40 = vpop.eup %1227 }
0x16de   :  { %v926_v41 = vadd.f32 1.0, %v1228_v40 }
0x16e0   :  { %1229 = vrcp.f32 %v926_v41 }
0x16ea   :  { %v1230_v42 = vpop.eup %1229 }
0x16eb   :  { %930 = vst.msk [vmem:[%s1416_s4] sm:$0xff] %vm929_vm2, %v1230_v42 }

</bundles_post_ra>
